<compile_context>
chip_gen: v7x
topology: tpu7x:2x2x1
jax: 0.10.0
libtpu: 0.0.40
codegen_flags: <defaults>
</compile_context>

<pallas_src>
import jax
import jax.numpy as jnp
from jax.experimental import pallas as pl
from jax.experimental.pallas import tpu as pltpu

BN_EPS = 1e-5  # torch.nn.BatchNorm1d default eps


def _contrastive_mlp_kernel(x_ref, w1_ref, bn1_ref, w2_ref, bn2_ref, o_ref):
    # x_ref  : (TB, D_in)    batch tile, compute dtype (bf16)
    # w1_ref : (D_in, H)     first Linear weight, (in, out) layout, compute dtype
    # bn1_ref: (2, H)    f32 row0 = gamma1/sqrt(var1+eps), row1 = beta1+(b1-mean1)*row0
    # w2_ref : (H, D_out)    second Linear weight, compute dtype
    # bn2_ref: (2, D_out) f32 row0 = 1/sqrt(var2+eps),     row1 = (b2-mean2)*row0
    # o_ref  : (TB, D_out)
    x = x_ref[...]

    # Layer 1: Linear + folded BatchNorm1d + ReLU (bf16 MXU, f32 accumulate).
    h = jnp.dot(x, w1_ref[...], preferred_element_type=jnp.float32)
    h = h * bn1_ref[0:1, :] + bn1_ref[1:2, :]      # (TB,H) * (1,H) broadcast FMA
    h = jnp.maximum(h, 0.0)                        # ReLU

    # Layer 2: Linear + folded BatchNorm1d(affine=False).
    h = h.astype(w2_ref.dtype)                     # downcast to MXU compute dtype
    y = jnp.dot(h, w2_ref[...], preferred_element_type=jnp.float32)
    y = y * bn2_ref[0:1, :] + bn2_ref[1:2, :]

    o_ref[...] = y.astype(o_ref.dtype)


def contrastive_mlp(x, params, *, block_b=256, bn_eps=BN_EPS,
                    compute_dtype=jnp.bfloat16):
    """x: (B, D_in) -> (B, D_out).  Weights stored as (in, out)."""
    B, D_in = x.shape
    H = params["w1"].shape[1]
    D_out = params["w2"].shape[1]
    out_dtype = x.dtype

    f32 = jnp.float32
    # Exact algebraic fold of inference-mode BatchNorm into scale/shift rows
    # (tiny vector-only preprocessing; large tensors untouched).
    a1 = (params["bn1_gamma"].astype(f32) /
          jnp.sqrt(params["bn1_var"].astype(f32) + bn_eps))
    c1 = (params["bn1_beta"].astype(f32) +
          (params["b1"].astype(f32) - params["bn1_mean"].astype(f32)) * a1)
    a2 = 1.0 / jnp.sqrt(params["bn2_var"].astype(f32) + bn_eps)
    c2 = (params["b2"].astype(f32) - params["bn2_mean"].astype(f32)) * a2
    bn1 = jnp.stack([a1, c1], axis=0)              # (2, H)    f32
    bn2 = jnp.stack([a2, c2], axis=0)              # (2, D_out) f32

    # Feed the MXU in bf16 (weights + activations); epilogue stays f32.
    w1 = params["w1"].astype(compute_dtype)
    w2 = params["w2"].astype(compute_dtype)
    x_in = x.astype(compute_dtype)

    # Batch tile: big enough to fill the MXU rows, aligned to the sublane
    # packing of the compute dtype (16 rows for bf16, 8 for f32).
    pack = 16 if jnp.dtype(compute_dtype).itemsize == 2 else 8
    tb = max(pack, min(block_b, B))
    tb = ((tb + pack - 1) // pack) * pack
    n_tiles = -(-B // tb)                          # ceil div
    B_pad = n_tiles * tb
    if B_pad != B:                                 # ragged batch: zero-pad rows
        x_in = jnp.pad(x_in, ((0, B_pad - B), (0, 0)))
    grid = (n_tiles,)

    # VMEM budget from actual buffers (weights budgeted at 2x even though we
    # request single-buffering, to leave headroom), capped below v7x's 64 MiB.
    cbytes = jnp.dtype(compute_dtype).itemsize
    obytes = jnp.dtype(out_dtype).itemsize
    vmem_bytes = (2 * tb * D_in * cbytes                 # x tile (double-buffered)
                  + 2 * tb * D_out * obytes              # out tile (double-buffered)
                  + 2 * (D_in * H + H * D_out) * cbytes  # resident weights
                  + 2 * 2 * (H + D_out) * 4)             # packed BN vectors
    vmem_limit = min(max(int(1.5 * vmem_bytes) + (4 << 20), 16 << 20), 56 << 20)

    flops = 2 * B_pad * (D_in * H + H * D_out)
    bytes_accessed = (B_pad * D_in * cbytes
                      + (D_in * H + H * D_out) * cbytes
                      + 2 * (H + D_out) * 4
                      + B_pad * D_out * obytes)
    cost = pl.CostEstimate(flops=int(flops), transcendentals=0,
                           bytes_accessed=int(bytes_accessed))

    out = pl.pallas_call(
        _contrastive_mlp_kernel,
        out_shape=jax.ShapeDtypeStruct((B_pad, D_out), out_dtype),
        grid_spec=pltpu.PrefetchScalarGridSpec(
            num_scalar_prefetch=0,
            grid=grid,
            in_specs=[
                # Batch tile streams; everything else is grid-invariant and
                # single-buffered (index_map constant -> no "next" block).
                pl.BlockSpec((tb, D_in), lambda i: (i, 0)),
                pl.BlockSpec((D_in, H), lambda i: (0, 0),
                             pipeline_mode=pl.Buffered(1)),
                pl.BlockSpec((2, H), lambda i: (0, 0),
                             pipeline_mode=pl.Buffered(1)),
                pl.BlockSpec((H, D_out), lambda i: (0, 0),
                             pipeline_mode=pl.Buffered(1)),
                pl.BlockSpec((2, D_out), lambda i: (0, 0),
                             pipeline_mode=pl.Buffered(1)),
            ],
            out_specs=pl.BlockSpec((tb, D_out), lambda i: (i, 0)),
        ),
        compiler_params=pltpu.CompilerParams(
            dimension_semantics=("parallel",),
            vmem_limit_bytes=vmem_limit,
        ),
        cost_estimate=cost,
    )(x_in, w1, bn1, w2, bn2)

    return out[:B] if B_pad != B else out


def _reference(x, params, bn_eps=BN_EPS):
    """Pure-JAX f32 transcription of the PyTorch forward (inference-mode BN)."""
    h = x @ params["w1"] + params["b1"]
    h = ((h - params["bn1_mean"]) / jnp.sqrt(params["bn1_var"] + bn_eps)
         * params["bn1_gamma"] + params["bn1_beta"])
    h = jnp.maximum(h, 0.0)
    y = h @ params["w2"] + params["b2"]
    y = (y - params["bn2_mean"]) / jnp.sqrt(params["bn2_var"] + bn_eps)
    return y


if __name__ == "__main__":
    key = jax.random.PRNGKey(0)
    ks = jax.random.split(key, 12)

    # TPU-friendly shapes: D_in=256 fills the v6e/v7x MXU contraction, H/D_out
    # are lane-dense multiples of 128, and B/tb gives an even grid of 2 tiles.
    B, D_in, H, D_out = 512, 256, 256, 128

    x = jax.random.normal(ks[0], (B, D_in), dtype=jnp.float32)
    params = {
        "w1": jax.random.normal(ks[1], (D_in, H), jnp.float32) * 0.05,
        "b1": 0.1 * jax.random.normal(ks[2], (H,), jnp.float32),
        "bn1_gamma": 1.0 + 0.1 * jax.random.normal(ks[3], (H,), jnp.float32),
        "bn1_beta": 0.1 * jax.random.normal(ks[4], (H,), jnp.float32),
        "bn1_mean": 0.1 * jax.random.normal(ks[5], (H,), jnp.float32),
        "bn1_var": jax.random.uniform(ks[6], (H,), jnp.float32, 0.5, 1.5),
        "w2": jax.random.normal(ks[7], (H, D_out), jnp.float32) * 0.05,
        "b2": 0.1 * jax.random.normal(ks[8], (D_out,), jnp.float32),
        "bn2_mean": 0.1 * jax.random.normal(ks[9], (D_out,), jnp.float32),
        "bn2_var": jax.random.uniform(ks[10], (D_out,), jnp.float32, 0.5, 1.5),
    }

    out = contrastive_mlp(x, params, block_b=256)
    out = jax.block_until_ready(out)

    ref = _reference(x, params)
    assert out.shape == (B, D_out)
    # bf16 MXU path vs f32 reference -> loosened tolerance (per perf review).
    assert jnp.allclose(out, ref, atol=5e-2, rtol=5e-2), "mismatch vs reference"
    assert float(jnp.mean(jnp.abs(out - ref))) < 1e-2, "mean error too large"

    print("KERNEL_OK")
</pallas_src>

<mosaic_0001>
module attributes {stable_mosaic.version = 11 : i64} {
  func.func @_contrastive_mlp_kernel(%arg0: i32, %arg1: memref<256x256xbf16, #tpu.memory_space<vmem>>, %arg2: memref<256x256xbf16, #tpu.memory_space<vmem>>, %arg3: memref<2x256xf32, #tpu.memory_space<vmem>>, %arg4: memref<256x128xbf16, #tpu.memory_space<vmem>>, %arg5: memref<2x128xf32, #tpu.memory_space<vmem>>, %arg6: memref<256x128xf32, #tpu.memory_space<vmem>>) attributes {dimension_semantics = [#tpu.dimension_semantics<parallel>], iteration_bounds = array<i64: 2>, scalar_prefetch = 0 : i64, scratch_operands = 0 : i64, tpu.core_type = #tpu.core_type<tc>, window_params = [{transform_indices = @transform_0, window_bounds = array<i64: 256, 256>}, {pipeline_mode = #tpu.pipeline_mode<synchronous>, transform_indices = @transform_1, window_bounds = array<i64: 256, 256>}, {pipeline_mode = #tpu.pipeline_mode<synchronous>, transform_indices = @transform_2, window_bounds = array<i64: 2, 256>}, {pipeline_mode = #tpu.pipeline_mode<synchronous>, transform_indices = @transform_3, window_bounds = array<i64: 256, 128>}, {pipeline_mode = #tpu.pipeline_mode<synchronous>, transform_indices = @transform_4, window_bounds = array<i64: 2, 128>}, {transform_indices = @transform_5, window_bounds = array<i64: 256, 128>}]} {
    %c0 = arith.constant 0 : index
    %c0_0 = arith.constant 0 : index
    %0 = vector.load %arg1[%c0, %c0_0] : memref<256x256xbf16, #tpu.memory_space<vmem>>, vector<256x256xbf16>
    %c0_1 = arith.constant 0 : index
    %c0_2 = arith.constant 0 : index
    %1 = vector.load %arg2[%c0_1, %c0_2] : memref<256x256xbf16, #tpu.memory_space<vmem>>, vector<256x256xbf16>
    %cst = arith.constant dense<0.000000e+00> : vector<256x256xf32>
    %2 = tpu.matmul %0, %1, %cst {dimension_numbers = #tpu.dot_dimension_numbers<[1], [0], [0], [1], [0, 0, 1, 1], [], []>} : vector<256x256xbf16>, vector<256x256xbf16>, vector<256x256xf32> -> vector<256x256xf32>
    %c0_3 = arith.constant 0 : index
    %c0_4 = arith.constant 0 : index
    %3 = vector.load %arg3[%c0_3, %c0_4] : memref<2x256xf32, #tpu.memory_space<vmem>>, vector<1x256xf32>
    %4 = vector.broadcast %3 : vector<1x256xf32> to vector<256x256xf32>
    %5 = arith.mulf %2, %4 : vector<256x256xf32>
    %c1 = arith.constant 1 : index
    %c0_5 = arith.constant 0 : index
    %6 = vector.load %arg3[%c1, %c0_5] : memref<2x256xf32, #tpu.memory_space<vmem>>, vector<1x256xf32>
    %7 = vector.broadcast %6 : vector<1x256xf32> to vector<256x256xf32>
    %8 = arith.addf %5, %7 : vector<256x256xf32>
    %cst_6 = arith.constant 0.000000e+00 : f32
    %9 = vector.broadcast %cst_6 : f32 to vector<256x256xf32>
    %10 = arith.maximumf %8, %9 : vector<256x256xf32>
    %11 = arith.truncf %10 : vector<256x256xf32> to vector<256x256xbf16>
    %c0_7 = arith.constant 0 : index
    %c0_8 = arith.constant 0 : index
    %12 = vector.load %arg4[%c0_7, %c0_8] : memref<256x128xbf16, #tpu.memory_space<vmem>>, vector<256x128xbf16>
    %cst_9 = arith.constant dense<0.000000e+00> : vector<256x128xf32>
    %13 = tpu.matmul %11, %12, %cst_9 {dimension_numbers = #tpu.dot_dimension_numbers<[1], [0], [0], [1], [0, 0, 1, 1], [], []>} : vector<256x256xbf16>, vector<256x128xbf16>, vector<256x128xf32> -> vector<256x128xf32>
    %c0_10 = arith.constant 0 : index
    %c0_11 = arith.constant 0 : index
    %14 = vector.load %arg5[%c0_10, %c0_11] : memref<2x128xf32, #tpu.memory_space<vmem>>, vector<1x128xf32>
    %15 = vector.broadcast %14 : vector<1x128xf32> to vector<256x128xf32>
    %16 = arith.mulf %13, %15 : vector<256x128xf32>
    %c1_12 = arith.constant 1 : index
    %c0_13 = arith.constant 0 : index
    %17 = vector.load %arg5[%c1_12, %c0_13] : memref<2x128xf32, #tpu.memory_space<vmem>>, vector<1x128xf32>
    %18 = vector.broadcast %17 : vector<1x128xf32> to vector<256x128xf32>
    %19 = arith.addf %16, %18 : vector<256x128xf32>
    %c0_14 = arith.constant 0 : index
    %c0_15 = arith.constant 0 : index
    %20 = vector.load %arg6[%c0_14, %c0_15] : memref<256x128xf32, #tpu.memory_space<vmem>>, vector<256x128xf32>
    tpu.vector_store %arg6[%c0_14, %c0_15], %19 {strides = array<i32>} : memref<256x128xf32, #tpu.memory_space<vmem>>, vector<256x128xf32>,
    return
  }
  func.func @transform_0(%arg0: i32) -> (i32, i32) {
    %c0_i32 = arith.constant 0 : i32
    %c0_i32_0 = arith.constant 0 : i32
    return %arg0, %c0_i32 : i32, i32
  }
  func.func @transform_1(%arg0: i32) -> (i32, i32) {
    %c0_i32 = arith.constant 0 : i32
    %c0_i32_0 = arith.constant 0 : i32
    %c0_i32_1 = arith.constant 0 : i32
    return %c0_i32, %c0_i32_0 : i32, i32
  }
  func.func @transform_2(%arg0: i32) -> (i32, i32) {
    %c0_i32 = arith.constant 0 : i32
    %c0_i32_0 = arith.constant 0 : i32
    %c0_i32_1 = arith.constant 0 : i32
    return %c0_i32, %c0_i32_0 : i32, i32
  }
  func.func @transform_3(%arg0: i32) -> (i32, i32) {
    %c0_i32 = arith.constant 0 : i32
    %c0_i32_0 = arith.constant 0 : i32
    %c0_i32_1 = arith.constant 0 : i32
    return %c0_i32, %c0_i32_0 : i32, i32
  }
  func.func @transform_4(%arg0: i32) -> (i32, i32) {
    %c0_i32 = arith.constant 0 : i32
    %c0_i32_0 = arith.constant 0 : i32
    %c0_i32_1 = arith.constant 0 : i32
    return %c0_i32, %c0_i32_0 : i32, i32
  }
  func.func @transform_5(%arg0: i32) -> (i32, i32) {
    %c0_i32 = arith.constant 0 : i32
    %c0_i32_0 = arith.constant 0 : i32
    return %arg0, %c0_i32 : i32, i32
  }
}

</mosaic_0001>

<bundles_post_ra>
// kernel: tpu_custom_call.1
= control target key start
LH: loop header
LB: loop body
LE: loop exit
PB: predicated region body
PF: predicated region fallthrough
CT: control target
= control target key end

     0   :  { %10 = vsyncpa [#allocation3], 0  ;;  %s2732_s0 = inlined_call_operand.hbm [shape: bf16[512,256], index: 0, kind: input, shape index: {}]   ;;  %s2733_s1 = inlined_call_operand.hbm [shape: bf16[256,256], index: 1, kind: input, shape index: {}]   ;;  %s2734_s2 = inlined_call_operand.vmem [shape: f32[2,256], index: 2, kind: input, shape index: {}]   ;;  %s2735_s3 = inlined_call_operand.hbm [shape: bf16[256,128], index: 3, kind: input, shape index: {}]   ;;  %s2736_s4 = inlined_call_operand.vmem [shape: f32[2,128], index: 4, kind: input, shape index: {}]   ;;  %s2737_s5 = inlined_call_operand.hbm [shape: f32[512,128], index: 5, kind: output, shape index: {}]  }
   0x1   :  { %12 = vsyncpa [#allocation3 + $0x1], 0 }
   0x2   :  { %13 = vsyncpa [#allocation6], 0 }
   0x3   :  { %14 = vsyncpa [#allocation4], 0 }
   0x4   :  { %16 = vsyncpa [#allocation4 + $0x1], 0  ;;  %s2203_s18 = smov 0   ;;  %s2205_s19 = smov 0  }
   0x5   :  { %s2207_s20 = smov 0   ;;  %s2209_s21 = smov 0  }
   0x6 LB: > { %s2224_s22 = sadd.s32 4294967295, %s2161_s21   ;;  %s1603_s23 = sadd.s32 4294967294, %s2161_s21   ;;  %s2161_s21 = sphi %s2209_s21, %s2757_s21   ;;  %s2157_s20 = sphi %s2207_s20, %s2756_s20   ;;  %s2153_s19 = sphi %s2205_s19, %s2755_s19   ;;  %s2149_s18 = sphi %s2203_s18, %s2754_s18  }
   0x7   : > { %p42_p0 = scmp.ne.s32.totalorder %s2153_s19, %s2149_s18  ;;  %p2738_p1 = scmp.eq.s32.totalorder %s2224_s22, 0 }
   0x8   : > { %p156_p3 = scmp.eq.s32.totalorder %s1603_s23, 1  ;;  %p1604_p5 = scmp.ge.s32.totalorder %s2161_s21, 1 }
   0x9   : > { %p2233_p4 = por %p2738_p1, %p42_p0  ;;  %p163_p7 = scmp.lt.s32.totalorder %s2161_s21, 3 }
   0xa   : > { %p2238_p6 = por %p156_p3, %p42_p0  ;;  %s2163_s27 = smov [#allocation5]  }
   0xb   : > { %s2741_s24 = scalar_select %p2233_p4, 1, 0 }
   0xc   : > { %s2742_s25 = scalar_select %p2238_p6, 1, 0 }
   0xd   : > { %p2243_p8 = pnand %p1604_p5, %p163_p7  ;;  %s175_s28 = sshll.u32 %s2163_s27, 4  ;;  %s2247_s28 = int_to_ptr.vmem [resolvable:$true] %s175_s28 }
   0xe   : > { %s2164_s30 = smov [#allocation7]   ;;  %s2005_s9 = scalar_lea.hbm %s2733_s1, 4096 }
   0xf   : > { %p1832_p9 = pneg %p2243_p8  ;;  %s191_s6 = sshll.u32 %s2164_s30, 4  ;;  %s2258_s6 = int_to_ptr.vmem [resolvable:$true] %s191_s6 }
  0x10   : > { %p2006_p12 = scmp.ne.s32.totalorder %s2733_s1, %s2005_s9  ;;  %p2012_p5 = scmp.lt.u32.totalorder %s2005_s9, %s2733_s1 }
  0x11   : > { %p2254_p11 = pnand %p1832_p9, %p2738_p1 }
  0x13   : > { %p2007_p13 = pneg %p2254_p11 }
  0x15   : > { %p2008_p0 = pnand %p2007_p13, %p2006_p12 }
  0x17   : > { %p2009_p3 = pneg %p2008_p0 }
  0x19   : > { %p2014_p7 = pnand %p2012_p5, %p2009_p3 }
  0x1b   : > { %2017 = shalt.err (!%p2014_p7)
}
  0x1c   : > { %s2018_s14 = scalar_lea.vmem %s2247_s28, 4096  ;;  %p2026_p2 = scmp.lt.s32.totalorder %s2247_s28, %s2247_s28 }
  0x1d   : > { %p2019_p9 = scmp.ne.s32.totalorder %s2247_s28, %s2018_s14  ;;  %p2027_p12 = scmp.lt.s32.totalorder %s2018_s14, %s2018_s14 }
  0x1f   : > { %p2021_p10 = pnand %p2019_p9, %p2007_p13  ;;  %p2028_p0 = por %p2027_p12, %p2026_p2 }
  0x21   : > { %p2022_p1 = pneg %p2021_p10 }
  0x23   : > { %p2029_p6 = pnand %p2028_p0, %p2022_p1 }
  0x25   : > { %2032 = shalt.err (!%p2029_p6)
}
  0x26   : > { %s2165_s15 = smov 128   ;;  %s2166_s16 = smov 8  }
  0x27   : > { %1835 = dma.hbm_to_vmem [thread:$0]  (!%p2254_p11), %s2733_s1, 4096, %s2247_s28, [#allocation6], %s2165_s15, %s2165_s15, %s2166_s16  }
  0x28   : > { %s2033_s7 = scalar_lea.hbm %s2735_s3, 2048 }
  0x29   : > { %p2034_p1 = scmp.ne.s32.totalorder %s2735_s3, %s2033_s7  ;;  %p2040_p10 = scmp.lt.u32.totalorder %s2033_s7, %s2735_s3 }
  0x2b   : > { %p2036_p2 = pnand %p2034_p1, %p2007_p13 }
  0x2d   : > { %p2037_p6 = pneg %p2036_p2 }
  0x2f   : > { %p2042_p3 = pnand %p2040_p10, %p2037_p6 }
  0x31   : > { %2045 = shalt.err (!%p2042_p3)
}
  0x32   : > { %s2046_s28 = scalar_lea.vmem %s2258_s6, 2048  ;;  %p2054_p12 = scmp.lt.s32.totalorder %s2258_s6, %s2258_s6 }
  0x33   : > { %p2047_p5 = scmp.ne.s32.totalorder %s2258_s6, %s2046_s28  ;;  %p2055_p0 = scmp.lt.s32.totalorder %s2046_s28, %s2046_s28 }
  0x35   : > { %p2049_p7 = pnand %p2047_p5, %p2007_p13  ;;  %p2056_p1 = por %p2055_p0, %p2054_p12 }
  0x37   : > { %p2050_p9 = pneg %p2049_p7 }
  0x39   : > { %p2057_p2 = pnand %p2056_p1, %p2050_p9 }
  0x3b   : > { %2060 = shalt.err (!%p2057_p2)
}
  0x3c   : > { %s2167_s12 = smov 64   ;;  %s2168_s13 = smov 4  }
  0x3d   : > { %1838 = dma.hbm_to_vmem [thread:$0]  (!%p2254_p11), %s2735_s3, 2048, %s2258_s6, [#allocation6], %s2167_s12, %s2167_s12, %s2168_s13  }
  0x3e   : > { %s2316_s23 = sadd.s32 1, %s2161_s21   ;;  %s29_s30 = sadd.s32 1, %s2157_s20 }
  0x3f   : > { %s26_s27 = ssub.s32 %s2161_s21, %s2316_s23  ;;  %p36_p6 = scmp.ne.s32.totalorder %s2157_s20, %s2153_s19 }
  0x40   : > { %p27_p13 = scmp.eq.s32.totalorder %s26_s27, 0  ;;  %p37_p10 = scmp.eq.s32.totalorder %s2161_s21, 0 }
  0x41   : > { %p2745_p5 = scmp.eq.s32.totalorder %s2224_s22, 1  ;;  %p1849_p9 = scmp.lt.s32.totalorder %s2161_s21, 2 }
  0x42   : > { %s2325_s7 = scalar_select %p27_p13, %s2157_s20, %s29_s30  }
  0x43   : > { %p38_p3 = por %p37_p10, %p36_p6  ;;  %p2329_p7 = por %p2745_p5, %p36_p6 }
  0x44   : > { %s208_s29 = sand.u32 1, %s2157_s20   ;;  %s1706_s6 = sshll.u32 %s2161_s21, 12 }
  0x45   : > { %s2746_s8 = scalar_select %p2329_p7, 1, 0 }
  0x46   : > { %s1608_s9 = sshll.u32 %s208_s29, 8  ;;  %s2339_s28 = scalar_lea.hbm %s2732_s0, %s1706_s6 }
  0x47   : > { %s212_s12 = scalar_lea.vmem [#allocation2], %s1608_s9  ;;  %p2343_p11 = pnand %p1849_p9, %p38_p3 }
  0x48   : > { %s220_s13 = sshll.u32 %s212_s12, 4  ;;  %s2347_s17 = scalar_lea.sflag [#allocation3], %s208_s29  ;;  %s2341_s13 = int_to_ptr.vmem [resolvable:$true] %s220_s13 }
  0x49   : > { %s2061_s27 = scalar_lea.hbm %s2339_s28, 4096  ;;  %p2063_p0 = pneg %p2343_p11 }
  0x4a   : > { %p2062_p12 = scmp.ne.s32.totalorder %s2339_s28, %s2061_s27  ;;  %s2066_s6 = scalar_lea.hbm %s2732_s0, 8192 }
  0x4b   : > { %p2067_p13 = scmp.lt.u32.totalorder %s2339_s28, %s2732_s0  ;;  %p2068_p6 = scmp.lt.u32.totalorder %s2066_s6, %s2061_s27 }
  0x4c   : > { %p2064_p1 = pnand %p2063_p0, %p2062_p12  ;;  %p2070_p3 = scmp.lt.u32.totalorder %s2061_s27, %s2339_s28 }
  0x4d   : > { %p2069_p10 = por %p2068_p6, %p2067_p13 }
  0x4e   : > { %p2065_p2 = pneg %p2064_p1 }
  0x4f   : > { %p2071_p5 = por %p2070_p3, %p2069_p10 }
  0x51   : > { %p2072_p9 = pnand %p2071_p5, %p2065_p2 }
  0x53   : > { %2075 = shalt.err (!%p2072_p9)
}
  0x54   : > { %s2076_s29 = scalar_lea.vmem %s2341_s13, 4096  ;;  %s2169_s12 = smov [#allocation2]  }
  0x55   : > { %p2077_p12 = scmp.ne.s32.totalorder %s2341_s13, %s2076_s29  ;;  %s2081_s30 = sshll.u32 %s2169_s12, 4  ;;  %s2082_s30 = int_to_ptr.vmem [resolvable:$false] %s2081_s30 }
  0x56   : > { %s2083_s9 = scalar_lea.vmem %s2082_s30, 8192  ;;  %p2084_p4 = scmp.lt.s32.totalorder %s2341_s13, %s2082_s30 }
  0x57   : > { %p2079_p1 = pnand %p2077_p12, %p2063_p0  ;;  %p2085_p13 = scmp.lt.s32.totalorder %s2083_s9, %s2076_s29 }
  0x59   : > { %p2080_p7 = pneg %p2079_p1  ;;  %p2086_p6 = por %p2085_p13, %p2084_p4 }
  0x5b   : > { %p2087_p10 = pnand %p2086_p6, %p2080_p7 }
  0x5d   : > { %2090 = shalt.err (!%p2087_p10)
}
  0x5e   : > { %1842 = dma.hbm_to_vmem [thread:$0]  (!%p2343_p11), %s2339_s28, 4096, %s2341_s13, %s2347_s17, %s2165_s15, %s2165_s15, %s2166_s16  }
  0x5f   : > { %232 = sbr.rel (%p2243_p8) target bundleno = 751 (0x2ef), region = 40  ;;  %s2381_s27 = sand.u32 (!%p2243_p8), 1, %s2153_s19  }
  0x60   : > { %s1613_s6 = sshll.u32 (!%p2243_p8), %s2381_s27, 8  ;;  %s235_s10 = scalar_lea.sflag (!%p2243_p8), [#allocation3], %s2381_s27 }
  0x61   : > { %s2387_s14 = scalar_lea.vmem (!%p2243_p8), [#allocation2], %s1613_s6  ;;  %p2748_p4 = scmp.ne.s32.totalorder (!%p2243_p8), %s2741_s24, 0 }
  0x66   : > { %2136 = dma.done.wait (%p2748_p4), %s235_s10, 4096  }
  0x67   : > { %2138 = vsyncadd (%p2748_p4), %s235_s10, 4294963200  ;;  %p2749_p7 = scmp.eq.s32.totalorder %s2224_s22, 0 }
  0x69   : > { %2140 = dma.done.wait (%p2749_p7), [#allocation6], 6144   ;;  %p2750_p8 = pmov %p2749_p7 }
  0x6a   : > { %v1893_v0 = vld [vmem:[#allocation5 + $0x4] ss:$8 sps:$4 sm:$0xff]   ;;  %v1895_v1 = vld [vmem:[#allocation5] ss:$8 sps:$4 sm:$0xff]   ;;  %v1896_v2 = vld [vmem:[#allocation5 + $0x14] ss:$8 sps:$4 sm:$0xff]  }
  0x6b   : > { %2142 = vsyncadd (%p2750_p8), [#allocation6], 4294961152  ;;  %660 = vmatprep.subr.bf16.mxu0 %v1893_v0  ;;  %v1898_v3 = vld [vmem:[#allocation5 + $0x10] ss:$8 sps:$4 sm:$0xff]   ;;  %v1899_v4 = vld [vmem:[#allocation5 + $0x24] ss:$8 sps:$4 sm:$0xff]  }
  0x6c   : > { %661 = vmatpush1.bf16.msra.mxu0 %v1895_v1  ;;  %v1901_v5 = vld [vmem:[#allocation5 + $0x20] ss:$8 sps:$4 sm:$0xff]   ;;  %v1902_v6 = vld [vmem:[#allocation5 + $0x34] ss:$8 sps:$4 sm:$0xff]   ;;  %v1904_v7 = vld [vmem:[#allocation5 + $0x30] ss:$8 sps:$4 sm:$0xff]  }
  0x6d   : > { %662 = vmatprep.subr.bf16.mxu0 %v1896_v2  ;;  %v1905_v8 = vld [vmem:[#allocation5 + $0x44] ss:$8 sps:$4 sm:$0xff]   ;;  %v1907_v9 = vld [vmem:[#allocation5 + $0x40] ss:$8 sps:$4 sm:$0xff]   ;;  %v1908_v10 = vld [vmem:[#allocation5 + $0x54] ss:$8 sps:$4 sm:$0xff]  }
  0x6e   : > { %v1910_v11 = vld [vmem:[#allocation5 + $0x50] ss:$8 sps:$4 sm:$0xff]   ;;  %v1911_v12 = vld [vmem:[#allocation5 + $0x64] ss:$8 sps:$4 sm:$0xff]   ;;  %v1913_v14 = vld [vmem:[#allocation5 + $0x60] ss:$8 sps:$4 sm:$0xff]  }
  0x6f   : > { %v1943_v13 = vld [vmem:[%s2387_s14 + $0x4] ss:$8 sps:$4 sm:$0xff]   ;;  %v1914_v15 = vld [vmem:[#allocation5 + $0x74] ss:$8 sps:$4 sm:$0xff]   ;;  %v1916_v16 = vld [vmem:[#allocation5 + $0x70] ss:$8 sps:$4 sm:$0xff]  }
  0x70   : > { %663 = vmatpush1.bf16.msra.mxu0 %v1898_v3  ;;  %692 = vmatprep.mubr.bf16.mxu0 %v1943_v13  ;;  %v1917_v17 = vld [vmem:[#allocation5 + $0x84] ss:$8 sps:$4 sm:$0xff]   ;;  %v1919_v18 = vld [vmem:[#allocation5 + $0x80] ss:$8 sps:$4 sm:$0xff]   ;;  %v1920_v19 = vld [vmem:[#allocation5 + $0x94] ss:$8 sps:$4 sm:$0xff]  }
  0x71   : > { %664 = vmatprep.subr.bf16.mxu0 %v1899_v4  ;;  %v1922_v20 = vld [vmem:[#allocation5 + $0x90] ss:$8 sps:$4 sm:$0xff]   ;;  %v1923_v21 = vld [vmem:[#allocation5 + $0xa4] ss:$8 sps:$4 sm:$0xff]   ;;  %v1925_v22 = vld [vmem:[#allocation5 + $0xa0] ss:$8 sps:$4 sm:$0xff]  }
  0x72   : > { %v1926_v23 = vld [vmem:[#allocation5 + $0xb4] ss:$8 sps:$4 sm:$0xff]   ;;  %v1928_v24 = vld [vmem:[#allocation5 + $0xb0] ss:$8 sps:$4 sm:$0xff]   ;;  %v1929_v25 = vld [vmem:[#allocation5 + $0xc4] ss:$8 sps:$4 sm:$0xff]  }
  0x73   : > { %v1931_v26 = vld [vmem:[#allocation5 + $0xc0] ss:$8 sps:$4 sm:$0xff]   ;;  %v1932_v27 = vld [vmem:[#allocation5 + $0xd4] ss:$8 sps:$4 sm:$0xff]   ;;  %v1934_v28 = vld [vmem:[#allocation5 + $0xd0] ss:$8 sps:$4 sm:$0xff]  }
  0x74   : > { %665 = vmatpush1.bf16.msra.mxu0 %v1901_v5  ;;  %v1935_v29 = vld [vmem:[#allocation5 + $0xe4] ss:$8 sps:$4 sm:$0xff]   ;;  %v1937_v30 = vld [vmem:[#allocation5 + $0xe0] ss:$8 sps:$4 sm:$0xff]   ;;  %v1938_v31 = vld [vmem:[#allocation5 + $0xf4] ss:$8 sps:$4 sm:$0xff]  }
  0x75   : > { %666 = vmatprep.subr.bf16.mxu0 %v1902_v6  ;;  %v1989_v32 = vld [vmem:[#allocation7 + $0x40] sm:$0xff]   ;;  %v1991_v34 = vld [vmem:[#allocation7 + $0x48] sm:$0xff]   ;;  %v1940_v35 = vld [vmem:[#allocation5 + $0xf0] ss:$8 sps:$4 sm:$0xff]   ;;  %s2586_s29 = scalar_lea.vmem [#allocation8], %s1613_s6  ;;  %s1707_s12 = sshll.u32 %s2224_s22, 12 }
  0x76   : > { %v1990_v33 = vld [vmem:[#allocation7] sm:$0xff]   ;;  %1708 = vmatprep.subr.bf16.mxu1 %v1989_v32  ;;  %v1992_v36 = vld [vmem:[#allocation7 + $0x8] sm:$0xff]   ;;  %v1993_v38 = vld [vmem:[#allocation7 + $0x50] sm:$0xff]   ;;  %s1511_s30 = sshll.u32 %s2586_s29, 4  ;;  %s2683_s10 = scalar_lea.hbm %s2737_s5, %s1707_s12  ;;  %s2685_s30 = int_to_ptr.vmem [resolvable:$true] %s1511_s30 }
  0x77   : > { %1709 = vmatpush3.bf16.msra.mxu1 %v1990_v33  ;;  %v1941_v37 = vld [vmem:[%s2387_s14] ss:$8 sps:$4 sm:$0xff]   ;;  %v1944_v39 = vld [vmem:[%s2387_s14 + $0x14] ss:$8 sps:$4 sm:$0xff]   ;;  %v1946_v43 = vld [vmem:[%s2387_s14 + $0x10] ss:$8 sps:$4 sm:$0xff]  }
  0x78   : > { %667 = vmatpush1.bf16.msra.mxu0 %v1904_v7  ;;  %1710 = vmatprep.subr.bf16.mxu1 %v1991_v34  ;;  %v1994_v40 = vld [vmem:[#allocation7 + $0x10] sm:$0xff]   ;;  %v1995_v41 = vld [vmem:[#allocation7 + $0x58] sm:$0xff]   ;;  %v1997_v44 = vld [vmem:[#allocation7 + $0x60] sm:$0xff]   ;;  %s1498_s22 = scalar_lea.sflag [#allocation4], %s2381_s27  ;;  %p2751_p0 = scmp.ne.s32.totalorder %s2746_s8, 0 }
  0x79   : > { %668 = vmatprep.subr.bf16.mxu0 %v1905_v8  ;;  %v1996_v42 = vld [vmem:[#allocation7 + $0x18] sm:$0xff]   ;;  %v1947_v45 = vld [vmem:[%s2387_s14 + $0x24] ss:$8 sps:$4 sm:$0xff]   ;;  %v1949_v47 = vld [vmem:[%s2387_s14 + $0x20] ss:$8 sps:$4 sm:$0xff]   ;;  %s2170_s24 = smov [#allocation8]  }
  0x7a   : > { %v1998_v46 = vld [vmem:[#allocation7 + $0x20] sm:$0xff]   ;;  %v1950_v48 = vld [vmem:[%s2387_s14 + $0x34] ss:$8 sps:$4 sm:$0xff]   ;;  %v1952_v49 = vld [vmem:[%s2387_s14 + $0x30] ss:$8 sps:$4 sm:$0xff]   ;;  %s2095_s26 = sshll.u32 %s2170_s24, 4  ;;  %s2096_s26 = int_to_ptr.vmem [resolvable:$false] %s2095_s26 }
  0x7b   : > { %1711 = vmatpush3.bf16.msra.mxu1 %v1992_v36  ;;  %v1953_v50 = vld [vmem:[%s2387_s14 + $0x44] ss:$8 sps:$4 sm:$0xff]   ;;  %v1955_v51 = vld [vmem:[%s2387_s14 + $0x40] ss:$8 sps:$4 sm:$0xff]   ;;  %v1956_v52 = vld [vmem:[%s2387_s14 + $0x54] ss:$8 sps:$4 sm:$0xff]   ;;  %p2098_p5 = scmp.lt.s32.totalorder %s2685_s30, %s2096_s26 }
  0x7c   : > { %669 = vmatpush1.bf16.msra.mxu0 %v1907_v9  ;;  %1712 = vmatprep.subr.bf16.mxu1 %v1993_v38  ;;  %v1958_v53 = vld [vmem:[%s2387_s14 + $0x50] ss:$8 sps:$4 sm:$0xff]   ;;  %v1959_v54 = vld [vmem:[%s2387_s14 + $0x64] ss:$8 sps:$4 sm:$0xff]   ;;  %v1961_v55 = vld [vmem:[%s2387_s14 + $0x60] ss:$8 sps:$4 sm:$0xff]  }
  0x7d   : > { %670 = vmatprep.subr.bf16.mxu0 %v1908_v10  ;;  %v1962_v56 = vld [vmem:[%s2387_s14 + $0x74] ss:$8 sps:$4 sm:$0xff]   ;;  %v1964_v57 = vld [vmem:[%s2387_s14 + $0x70] ss:$8 sps:$4 sm:$0xff]   ;;  %v1965_v58 = vld [vmem:[%s2387_s14 + $0x84] ss:$8 sps:$4 sm:$0xff]  }
  0x7e   : > { %v1967_v59 = vld [vmem:[%s2387_s14 + $0x80] ss:$8 sps:$4 sm:$0xff]   ;;  %v1968_v60 = vld [vmem:[%s2387_s14 + $0x94] ss:$8 sps:$4 sm:$0xff]   ;;  %v1970_v61 = vld [vmem:[%s2387_s14 + $0x90] ss:$8 sps:$4 sm:$0xff]  }
  0x7f   : > { %1713 = vmatpush3.bf16.msra.mxu1 %v1994_v40  ;;  %v1971_v62 = vld [vmem:[%s2387_s14 + $0xa4] ss:$8 sps:$4 sm:$0xff]   ;;  %v1973_v63 = vld [vmem:[%s2387_s14 + $0xa0] ss:$8 sps:$4 sm:$0xff]   ;;  %v1974_v0 = vld [vmem:[%s2387_s14 + $0xb4] ss:$8 sps:$4 sm:$0xff]  }
  0x80   : > { %671 = vmatpush1.bf16.msra.mxu0 %v1910_v11  ;;  %1714 = vmatprep.subr.bf16.mxu1 %v1995_v41  ;;  %v1999_v1 = vld [vmem:[#allocation7 + $0x68] sm:$0xff]   ;;  %v1976_v3 = vld [vmem:[%s2387_s14 + $0xb0] ss:$8 sps:$4 sm:$0xff]   ;;  %v1980_v10 = vld [vmem:[%s2387_s14 + $0xd4] ss:$8 sps:$4 sm:$0xff]   ;;  %s2097_s15 = scalar_lea.vmem %s2096_s26, 8192 }
  0x81   : > { %672 = vmatprep.subr.bf16.mxu0 %v1911_v12  ;;  %v2000_v2 = vld [vmem:[#allocation7 + $0x28] sm:$0xff]   ;;  %v2001_v5 = vld [vmem:[#allocation7 + $0x70] sm:$0xff]   ;;  %v2003_v7 = vld [vmem:[#allocation7 + $0x78] sm:$0xff]  }
  0x82   : > { %v1977_v4 = vld [vmem:[%s2387_s14 + $0xc4] ss:$8 sps:$4 sm:$0xff]   ;;  %v2002_v6 = vld [vmem:[#allocation7 + $0x30] sm:$0xff]   ;;  %v2004_v8 = vld [vmem:[#allocation7 + $0x38] sm:$0xff]  }
  0x83   : > { %1715 = vmatpush3.bf16.msra.mxu1 %v1996_v42  ;;  %v1979_v9 = vld [vmem:[%s2387_s14 + $0xc0] ss:$8 sps:$4 sm:$0xff]   ;;  %v1982_v11 = vld [vmem:[%s2387_s14 + $0xd0] ss:$8 sps:$4 sm:$0xff]   ;;  %v1983_v12 = vld [vmem:[%s2387_s14 + $0xe4] ss:$8 sps:$4 sm:$0xff]  }
  0x84   : > { %673 = vmatpush1.bf16.msra.mxu0 %v1913_v14  ;;  %1716 = vmatprep.subr.bf16.mxu1 %v1997_v44  ;;  %v1985_v13 = vld [vmem:[%s2387_s14 + $0xe0] ss:$8 sps:$4 sm:$0xff]   ;;  %v1986_v14 = vld [vmem:[%s2387_s14 + $0xf4] ss:$8 sps:$4 sm:$0xff]  }
  0x85   : > { %674 = vmatprep.subr.bf16.mxu0 %v1914_v15  ;;  %v1988_v15 = vld [vmem:[%s2387_s14 + $0xf0] ss:$8 sps:$4 sm:$0xff]   ;;  %s2091_s14 = scalar_lea.vmem %s2685_s30, 4096 }
  0x86   : > { %p2092_p11 = scmp.ne.s32.totalorder %s2685_s30, %s2091_s14  ;;  %p2099_p9 = scmp.lt.s32.totalorder %s2097_s15, %s2091_s14 }
  0x87   : > { %1717 = vmatpush3.bf16.msra.mxu1 %v1998_v46 }
  0x88   : > { %675 = vmatpush1.bf16.msra.mxu0 %v1916_v16  ;;  %1718 = vmatprep.subr.bf16.mxu1 %v1999_v1  ;;  %v855_v16 = vlaneseq  ;;  %p2093_p2 = pnand %p2092_p11, %p2751_p0  ;;  %p2100_p12 = por %p2099_p9, %p2098_p5 }
  0x89   : > { %676 = vmatprep.subr.bf16.mxu0 %v1917_v17 }
  0x8a   : > { %v856_v17 = vshrl.u32 %v855_v16, 7  ;;  %p2094_p3 = pneg %p2093_p2 }
  0x8b   : > { %1719 = vmatpush3.bf16.msra.mxu1 %v2000_v2 }
  0x8c   : > { %677 = vmatpush1.bf16.msra.mxu0 %v1919_v18  ;;  %1720 = vmatprep.subr.bf16.mxu1 %v2001_v5  ;;  %v857_v18 = vsub.s32 0, %v856_v17  ;;  %p2101_p1 = pnand %p2100_p12, %p2094_p3 }
  0x8d   : > { %678 = vmatprep.subr.bf16.mxu0 %v1920_v19  ;;  %v853_v19 = vld [vmem:[%s2734_s2] ss:$2 sm:$0x3] }
  0x8f   : > { %1721 = vmatpush3.bf16.msra.mxu1 %v2002_v6 }
  0x90   : > { %679 = vmatpush1.bf16.msra.mxu0 %v1922_v20  ;;  %1722 = vmatprep.subr.bf16.mxu1 %v2003_v7  ;;  %v861_v20 = vsub.s32 1, %v856_v17 }
  0x91   : > { %680 = vmatprep.subr.bf16.mxu0 %v1923_v21  ;;  %v1681_v21 = vld [vmem:[%s2734_s2 + $0x1] ss:$2 sm:$0x3] }
  0x93   : > { %1723 = vmatpush3.bf16.msra.mxu1 %v2004_v8 }
  0x94   : > { %681 = vmatpush1.bf16.msra.mxu0 %v1925_v22  ;;  %v2435_v22 = vrot.slane %v853_v19, %v857_v18 }
  0x95   : > { %682 = vmatprep.subr.bf16.mxu0 %v1926_v23  ;;  %v2437_v23 = vrot.slane %v853_v19, %v861_v20 }
  0x98   : > { %683 = vmatpush1.bf16.msra.mxu0 %v1928_v24  ;;  %v2439_v24 = vrot.slane %v1681_v21, %v857_v18 }
  0x99   : > { %684 = vmatprep.subr.bf16.mxu0 %v1929_v25 }
  0x9c   : > { %685 = vmatpush1.bf16.msra.mxu0 %v1931_v26  ;;  %v2441_v26 = vrot.slane %v1681_v21, %v861_v20 }
  0x9d   : > { %686 = vmatprep.subr.bf16.mxu0 %v1932_v27 }
  0xa0   : > { %687 = vmatpush1.bf16.msra.mxu0 %v1934_v28 }
  0xa1   : > { %688 = vmatprep.subr.bf16.mxu0 %v1935_v29 }
  0xa4   : > { %689 = vmatpush1.bf16.msra.mxu0 %v1937_v30 }
  0xa5   : > { %690 = vmatprep.subr.bf16.mxu0 %v1938_v31 }
  0xa8   : > { %691 = vmatpush1.bf16.msra.mxu0 %v1940_v35 }
  0xab   : > { %693 = vmatmul.mubr.bf16.vlgmr.msra.gmra.mrb[0].mxu0 %v1941_v37 }
  0xac   : > { %702 = vmatprep.mubr.bf16.mxu0 %v1944_v39 }
  0xb3   : > { %703 = vmatmul.mubr.bf16.gmra.mrb[4].mxu0 %v1946_v43 }
  0xb4   : > { %712 = vmatprep.mubr.bf16.mxu0 %v1947_v45 }
  0xbb   : > { %713 = vmatmul.mubr.bf16.gmra.mrb[8].mxu0 %v1949_v47 }
  0xbc   : > { %722 = vmatprep.mubr.bf16.mxu0 %v1950_v48 }
  0xc3   : > { %723 = vmatmul.mubr.bf16.gmra.mrb[12].mxu0 %v1952_v49 }
  0xc4   : > { %732 = vmatprep.mubr.bf16.mxu0 %v1953_v50 }
  0xcb   : > { %733 = vmatmul.mubr.bf16.gmra.mrb[16].mxu0 %v1955_v51 }
  0xcc   : > { %742 = vmatprep.mubr.bf16.mxu0 %v1956_v52 }
  0xd3   : > { %743 = vmatmul.mubr.bf16.gmra.mrb[20].mxu0 %v1958_v53 }
  0xd4   : > { %752 = vmatprep.mubr.bf16.mxu0 %v1959_v54 }
  0xdb   : > { %753 = vmatmul.mubr.bf16.gmra.mrb[24].mxu0 %v1961_v55 }
  0xdc   : > { %762 = vmatprep.mubr.bf16.mxu0 %v1962_v56 }
  0xe3   : > { %763 = vmatmul.mubr.bf16.gmra.mrb[28].mxu0 %v1964_v57 }
  0xe4   : > { %772 = vmatprep.mubr.bf16.mxu0 %v1965_v58 }
  0xeb   : > { %773 = vmatmul.mubr.bf16.gmra.mrb[32].mxu0 %v1967_v59 }
  0xec   : > { %782 = vmatprep.mubr.bf16.mxu0 %v1968_v60 }
  0xf3   : > { %783 = vmatmul.mubr.bf16.gmra.mrb[36].mxu0 %v1970_v61 }
  0xf4   : > { %792 = vmatprep.mubr.bf16.mxu0 %v1971_v62 }
  0xfb   : > { %793 = vmatmul.mubr.bf16.gmra.mrb[40].mxu0 %v1973_v63 }
  0xfc   : > { %802 = vmatprep.mubr.bf16.mxu0 %v1974_v0 }
 0x103   : > { %803 = vmatmul.mubr.bf16.gmra.mrb[44].mxu0 %v1976_v3 }
 0x104   : > { %812 = vmatprep.mubr.bf16.mxu0 %v1977_v4 }
 0x10b   : > { %813 = vmatmul.mubr.bf16.gmra.mrb[48].mxu0 %v1979_v9 }
 0x10c   : > { %822 = vmatprep.mubr.bf16.mxu0 %v1980_v10 }
 0x113   : > { %823 = vmatmul.mubr.bf16.gmra.mrb[52].mxu0 %v1982_v11 }
 0x114   : > { %832 = vmatprep.mubr.bf16.mxu0 %v1983_v12 }
 0x11b   : > { %833 = vmatmul.mubr.bf16.gmra.mrb[56].mxu0 %v1985_v13 }
 0x11c   : > { %842 = vmatprep.mubr.bf16.mxu0 %v1986_v14 }
 0x123   : > { %843 = vmatmul.mubr.bf16.gmra.mrb[60].mxu0 %v1988_v15 }
 0x17e   : > { %v694_v25 = vpop.f32.mrb[0].mxu0 }
 0x17f   : > { %v865_v27 = vmul.f32 %v2435_v22, %v694_v25  ;;  %v696_v28 = vpop.f32.mrb[1].mxu0 }
 0x180   : > { %v866_v29 = vmul.f32 %v2437_v23, %v696_v28  ;;  %v698_v30 = vpop.f32.mrb[2].mxu0 }
 0x181   : > { %v942_v31 = vadd.f32 %v2439_v24, %v865_v27  ;;  %v867_v32 = vmul.f32 %v2435_v22, %v698_v30  ;;  %v700_v33 = vpop.f32.mrb[3].mxu0 }
 0x182   : > { %v868_v34 = vmul.f32 %v2437_v23, %v700_v33  ;;  %v943_v35 = vadd.f32 %v2441_v26, %v866_v29 }
 0x183   : > { %v944_v36 = vadd.f32 %v2439_v24, %v867_v32  ;;  %v1006_v38 = vmax.f32 %v942_v31, 0.0 }
 0x184   : > { %v945_v37 = vadd.f32 %v2441_v26, %v868_v34  ;;  %v1007_v41 = vmax.f32 %v943_v35, 0.0 }
 0x185   : > { %v1008_v39 = vmax.f32 %v944_v36, 0.0 }
 0x186   : > { %v704_v40 = vpop.f32.mrb[4].mxu0  ;;  %v1009_v42 = vmax.f32 %v945_v37, 0.0 }
 0x187   : > { %v869_v43 = vmul.f32 %v2435_v22, %v704_v40  ;;  %v706_v44 = vpop.f32.mrb[5].mxu0  ;;  %v1070_v45 = vpack.c.bf16 %v1008_v39, %v1006_v38 }
 0x188   : > { %v870_v46 = vmul.f32 %v2437_v23, %v706_v44  ;;  %v708_v47 = vpop.f32.mrb[6].mxu0  ;;  %v1071_v48 = vpack.c.bf16 %v1009_v42, %v1007_v41 }
 0x189   : > { %v946_v49 = vadd.f32 %v2439_v24, %v869_v43  ;;  %v871_v50 = vmul.f32 %v2435_v22, %v708_v47  ;;  %v710_v51 = vpop.f32.mrb[7].mxu0 }
 0x18a   : > { %v947_v52 = vadd.f32 %v2441_v26, %v870_v46  ;;  %v872_v53 = vmul.f32 %v2437_v23, %v710_v51  ;;  %1262 = vmatprep.mubr.bf16.mxu1 %v1071_v48 }
 0x18b   : > { %v948_v54 = vadd.f32 %v2439_v24, %v871_v50  ;;  %1263 = vmatmul.mubr.bf16.vlgmr.msra.gmra.mrb[0].mxu1 %v1070_v45  ;;  %v1010_v56 = vmax.f32 %v946_v49, 0.0 }
 0x18c   : > { %v949_v55 = vadd.f32 %v2441_v26, %v872_v53  ;;  %v1011_v58 = vmax.f32 %v947_v52, 0.0 }
 0x18d   : > { %v1012_v57 = vmax.f32 %v948_v54, 0.0 }
 0x18e   : > { %v1013_v59 = vmax.f32 %v949_v55, 0.0  ;;  %v714_v60 = vpop.f32.mrb[8].mxu0 }
 0x18f   : > { %v873_v61 = vmul.f32 %v2435_v22, %v714_v60  ;;  %v716_v62 = vpop.f32.mrb[9].mxu0  ;;  %v1072_v63 = vpack.c.bf16 %v1012_v57, %v1010_v56 }
 0x190   : > { %v874_v0 = vmul.f32 %v2437_v23, %v716_v62  ;;  %v718_v1 = vpop.f32.mrb[10].mxu0  ;;  %v1073_v2 = vpack.c.bf16 %v1013_v59, %v1011_v58 }
 0x191   : > { %v950_v3 = vadd.f32 %v2439_v24, %v873_v61  ;;  %v875_v4 = vmul.f32 %v2435_v22, %v718_v1  ;;  %v720_v5 = vpop.f32.mrb[11].mxu0 }
 0x192   : > { %v951_v6 = vadd.f32 %v2441_v26, %v874_v0  ;;  %v876_v7 = vmul.f32 %v2437_v23, %v720_v5  ;;  %1270 = vmatprep.mubr.bf16.mxu1 %v1073_v2 }
 0x193   : > { %v952_v8 = vadd.f32 %v2439_v24, %v875_v4  ;;  %1271 = vmatmul.mubr.bf16.gmra.mrb[4].mxu1 %v1072_v63  ;;  %v1014_v10 = vmax.f32 %v950_v3, 0.0 }
 0x194   : > { %v953_v9 = vadd.f32 %v2441_v26, %v876_v7  ;;  %v1015_v12 = vmax.f32 %v951_v6, 0.0 }
 0x195   : > { %v1016_v11 = vmax.f32 %v952_v8, 0.0 }
 0x196   : > { %v1017_v13 = vmax.f32 %v953_v9, 0.0  ;;  %v724_v14 = vpop.f32.mrb[12].mxu0 }
 0x197   : > { %v877_v15 = vmul.f32 %v2435_v22, %v724_v14  ;;  %v726_v16 = vpop.f32.mrb[13].mxu0  ;;  %v1074_v17 = vpack.c.bf16 %v1016_v11, %v1014_v10 }
 0x198   : > { %v878_v18 = vmul.f32 %v2437_v23, %v726_v16  ;;  %v728_v19 = vpop.f32.mrb[14].mxu0  ;;  %v1075_v20 = vpack.c.bf16 %v1017_v13, %v1015_v12 }
 0x199   : > { %v954_v21 = vadd.f32 %v2439_v24, %v877_v15  ;;  %v879_v25 = vmul.f32 %v2435_v22, %v728_v19  ;;  %v730_v27 = vpop.f32.mrb[15].mxu0 }
 0x19a   : > { %v955_v28 = vadd.f32 %v2441_v26, %v878_v18  ;;  %v880_v29 = vmul.f32 %v2437_v23, %v730_v27  ;;  %1278 = vmatprep.mubr.bf16.mxu1 %v1075_v20 }
 0x19b   : > { %v956_v30 = vadd.f32 %v2439_v24, %v879_v25  ;;  %1279 = vmatmul.mubr.bf16.gmra.mrb[8].mxu1 %v1074_v17  ;;  %v1018_v32 = vmax.f32 %v954_v21, 0.0 }
 0x19c   : > { %v957_v31 = vadd.f32 %v2441_v26, %v880_v29  ;;  %v1019_v34 = vmax.f32 %v955_v28, 0.0 }
 0x19d   : > { %v1020_v33 = vmax.f32 %v956_v30, 0.0 }
 0x19e   : > { %v1021_v35 = vmax.f32 %v957_v31, 0.0  ;;  %v734_v36 = vpop.f32.mrb[16].mxu0 }
 0x19f   : > { %v881_v37 = vmul.f32 %v2435_v22, %v734_v36  ;;  %v736_v38 = vpop.f32.mrb[17].mxu0  ;;  %v1076_v39 = vpack.c.bf16 %v1020_v33, %v1018_v32 }
 0x1a0   : > { %v882_v40 = vmul.f32 %v2437_v23, %v736_v38  ;;  %v738_v41 = vpop.f32.mrb[18].mxu0  ;;  %v1077_v42 = vpack.c.bf16 %v1021_v35, %v1019_v34 }
 0x1a1   : > { %v958_v43 = vadd.f32 %v2439_v24, %v881_v37  ;;  %v883_v44 = vmul.f32 %v2435_v22, %v738_v41  ;;  %v740_v45 = vpop.f32.mrb[19].mxu0 }
 0x1a2   : > { %v959_v46 = vadd.f32 %v2441_v26, %v882_v40  ;;  %v884_v47 = vmul.f32 %v2437_v23, %v740_v45  ;;  %1286 = vmatprep.mubr.bf16.mxu1 %v1077_v42 }
 0x1a3   : > { %v960_v48 = vadd.f32 %v2439_v24, %v883_v44  ;;  %1287 = vmatmul.mubr.bf16.gmra.mrb[12].mxu1 %v1076_v39  ;;  %v1022_v50 = vmax.f32 %v958_v43, 0.0 }
 0x1a4   : > { %v961_v49 = vadd.f32 %v2441_v26, %v884_v47  ;;  %v1023_v52 = vmax.f32 %v959_v46, 0.0 }
 0x1a5   : > { %v1024_v51 = vmax.f32 %v960_v48, 0.0 }
 0x1a6   : > { %v1025_v53 = vmax.f32 %v961_v49, 0.0  ;;  %v744_v54 = vpop.f32.mrb[20].mxu0 }
 0x1a7   : > { %v885_v55 = vmul.f32 %v2435_v22, %v744_v54  ;;  %v746_v56 = vpop.f32.mrb[21].mxu0  ;;  %v1078_v57 = vpack.c.bf16 %v1024_v51, %v1022_v50 }
 0x1a8   : > { %v886_v58 = vmul.f32 %v2437_v23, %v746_v56  ;;  %v748_v59 = vpop.f32.mrb[22].mxu0  ;;  %v1079_v60 = vpack.c.bf16 %v1025_v53, %v1023_v52 }
 0x1a9   : > { %v962_v61 = vadd.f32 %v2439_v24, %v885_v55  ;;  %v887_v62 = vmul.f32 %v2435_v22, %v748_v59  ;;  %v750_v63 = vpop.f32.mrb[23].mxu0 }
 0x1aa   : > { %v963_v0 = vadd.f32 %v2441_v26, %v886_v58  ;;  %v888_v1 = vmul.f32 %v2437_v23, %v750_v63  ;;  %1294 = vmatprep.mubr.bf16.mxu1 %v1079_v60 }
 0x1ab   : > { %v964_v2 = vadd.f32 %v2439_v24, %v887_v62  ;;  %1295 = vmatmul.mubr.bf16.gmra.mrb[16].mxu1 %v1078_v57  ;;  %v1026_v4 = vmax.f32 %v962_v61, 0.0 }
 0x1ac   : > { %v965_v3 = vadd.f32 %v2441_v26, %v888_v1  ;;  %v1027_v6 = vmax.f32 %v963_v0, 0.0 }
 0x1ad   : > { %v1028_v5 = vmax.f32 %v964_v2, 0.0 }
 0x1ae   : > { %v1029_v7 = vmax.f32 %v965_v3, 0.0  ;;  %v754_v8 = vpop.f32.mrb[24].mxu0 }
 0x1af   : > { %v889_v9 = vmul.f32 %v2435_v22, %v754_v8  ;;  %v756_v10 = vpop.f32.mrb[25].mxu0  ;;  %v1080_v11 = vpack.c.bf16 %v1028_v5, %v1026_v4 }
 0x1b0   : > { %v890_v12 = vmul.f32 %v2437_v23, %v756_v10  ;;  %v758_v13 = vpop.f32.mrb[26].mxu0  ;;  %v1081_v14 = vpack.c.bf16 %v1029_v7, %v1027_v6 }
 0x1b1   : > { %v966_v15 = vadd.f32 %v2439_v24, %v889_v9  ;;  %v891_v16 = vmul.f32 %v2435_v22, %v758_v13  ;;  %v760_v17 = vpop.f32.mrb[27].mxu0 }
 0x1b2   : > { %v967_v18 = vadd.f32 %v2441_v26, %v890_v12  ;;  %v892_v19 = vmul.f32 %v2437_v23, %v760_v17  ;;  %1302 = vmatprep.mubr.bf16.mxu1 %v1081_v14 }
 0x1b3   : > { %v968_v20 = vadd.f32 %v2439_v24, %v891_v16  ;;  %1303 = vmatmul.mubr.bf16.gmra.mrb[20].mxu1 %v1080_v11  ;;  %v1030_v25 = vmax.f32 %v966_v15, 0.0 }
 0x1b4   : > { %v969_v21 = vadd.f32 %v2441_v26, %v892_v19  ;;  %v1031_v28 = vmax.f32 %v967_v18, 0.0 }
 0x1b5   : > { %v1032_v27 = vmax.f32 %v968_v20, 0.0 }
 0x1b6   : > { %v1033_v29 = vmax.f32 %v969_v21, 0.0  ;;  %v764_v30 = vpop.f32.mrb[28].mxu0 }
 0x1b7   : > { %v893_v31 = vmul.f32 %v2435_v22, %v764_v30  ;;  %v766_v32 = vpop.f32.mrb[29].mxu0  ;;  %v1082_v33 = vpack.c.bf16 %v1032_v27, %v1030_v25 }
 0x1b8   : > { %v894_v34 = vmul.f32 %v2437_v23, %v766_v32  ;;  %v768_v35 = vpop.f32.mrb[30].mxu0  ;;  %v1083_v36 = vpack.c.bf16 %v1033_v29, %v1031_v28 }
 0x1b9   : > { %v970_v37 = vadd.f32 %v2439_v24, %v893_v31  ;;  %v895_v38 = vmul.f32 %v2435_v22, %v768_v35  ;;  %v770_v39 = vpop.f32.mrb[31].mxu0 }
 0x1ba   : > { %v971_v40 = vadd.f32 %v2441_v26, %v894_v34  ;;  %v896_v41 = vmul.f32 %v2437_v23, %v770_v39  ;;  %1310 = vmatprep.mubr.bf16.mxu1 %v1083_v36 }
 0x1bb   : > { %v972_v42 = vadd.f32 %v2439_v24, %v895_v38  ;;  %1311 = vmatmul.mubr.bf16.gmra.mrb[24].mxu1 %v1082_v33  ;;  %v1034_v44 = vmax.f32 %v970_v37, 0.0 }
 0x1bc   : > { %v973_v43 = vadd.f32 %v2441_v26, %v896_v41  ;;  %v1035_v46 = vmax.f32 %v971_v40, 0.0 }
 0x1bd   : > { %v1036_v45 = vmax.f32 %v972_v42, 0.0 }
 0x1be   : > { %v1037_v47 = vmax.f32 %v973_v43, 0.0  ;;  %v774_v48 = vpop.f32.mrb[32].mxu0 }
 0x1bf   : > { %v897_v49 = vmul.f32 %v2435_v22, %v774_v48  ;;  %v776_v50 = vpop.f32.mrb[33].mxu0  ;;  %v1084_v51 = vpack.c.bf16 %v1036_v45, %v1034_v44 }
 0x1c0   : > { %v898_v52 = vmul.f32 %v2437_v23, %v776_v50  ;;  %v778_v53 = vpop.f32.mrb[34].mxu0  ;;  %v1085_v54 = vpack.c.bf16 %v1037_v47, %v1035_v46 }
 0x1c1   : > { %v974_v55 = vadd.f32 %v2439_v24, %v897_v49  ;;  %v899_v56 = vmul.f32 %v2435_v22, %v778_v53  ;;  %v780_v57 = vpop.f32.mrb[35].mxu0 }
 0x1c2   : > { %v975_v58 = vadd.f32 %v2441_v26, %v898_v52  ;;  %v900_v59 = vmul.f32 %v2437_v23, %v780_v57  ;;  %1318 = vmatprep.mubr.bf16.mxu1 %v1085_v54 }
 0x1c3   : > { %v976_v60 = vadd.f32 %v2439_v24, %v899_v56  ;;  %1319 = vmatmul.mubr.bf16.gmra.mrb[28].mxu1 %v1084_v51  ;;  %v1038_v62 = vmax.f32 %v974_v55, 0.0 }
 0x1c4   : > { %v977_v61 = vadd.f32 %v2441_v26, %v900_v59  ;;  %v1039_v0 = vmax.f32 %v975_v58, 0.0 }
 0x1c5   : > { %v1040_v63 = vmax.f32 %v976_v60, 0.0 }
 0x1c6   : > { %v1041_v1 = vmax.f32 %v977_v61, 0.0  ;;  %v784_v2 = vpop.f32.mrb[36].mxu0 }
 0x1c7   : > { %v901_v3 = vmul.f32 %v2435_v22, %v784_v2  ;;  %v786_v4 = vpop.f32.mrb[37].mxu0  ;;  %v1086_v5 = vpack.c.bf16 %v1040_v63, %v1038_v62 }
 0x1c8   : > { %v902_v6 = vmul.f32 %v2437_v23, %v786_v4  ;;  %v788_v7 = vpop.f32.mrb[38].mxu0  ;;  %v1087_v8 = vpack.c.bf16 %v1041_v1, %v1039_v0 }
 0x1c9   : > { %v978_v9 = vadd.f32 %v2439_v24, %v901_v3  ;;  %v903_v10 = vmul.f32 %v2435_v22, %v788_v7  ;;  %v790_v11 = vpop.f32.mrb[39].mxu0 }
 0x1ca   : > { %v979_v12 = vadd.f32 %v2441_v26, %v902_v6  ;;  %v904_v13 = vmul.f32 %v2437_v23, %v790_v11  ;;  %1326 = vmatprep.mubr.bf16.mxu1 %v1087_v8 }
 0x1cb   : > { %v980_v14 = vadd.f32 %v2439_v24, %v903_v10  ;;  %1327 = vmatmul.mubr.bf16.gmra.mrb[32].mxu1 %v1086_v5  ;;  %v1042_v16 = vmax.f32 %v978_v9, 0.0 }
 0x1cc   : > { %v981_v15 = vadd.f32 %v2441_v26, %v904_v13  ;;  %v1043_v18 = vmax.f32 %v979_v12, 0.0 }
 0x1cd   : > { %v1044_v17 = vmax.f32 %v980_v14, 0.0 }
 0x1ce   : > { %v1045_v19 = vmax.f32 %v981_v15, 0.0  ;;  %v794_v20 = vpop.f32.mrb[40].mxu0 }
 0x1cf   : > { %v905_v21 = vmul.f32 %v2435_v22, %v794_v20  ;;  %v796_v25 = vpop.f32.mrb[41].mxu0  ;;  %v1088_v27 = vpack.c.bf16 %v1044_v17, %v1042_v16 }
 0x1d0   : > { %v906_v28 = vmul.f32 %v2437_v23, %v796_v25  ;;  %v798_v29 = vpop.f32.mrb[42].mxu0  ;;  %v1089_v30 = vpack.c.bf16 %v1045_v19, %v1043_v18 }
 0x1d1   : > { %v982_v31 = vadd.f32 %v2439_v24, %v905_v21  ;;  %v907_v32 = vmul.f32 %v2435_v22, %v798_v29  ;;  %v800_v33 = vpop.f32.mrb[43].mxu0 }
 0x1d2   : > { %v983_v34 = vadd.f32 %v2441_v26, %v906_v28  ;;  %v908_v35 = vmul.f32 %v2437_v23, %v800_v33  ;;  %1334 = vmatprep.mubr.bf16.mxu1 %v1089_v30 }
 0x1d3   : > { %v984_v36 = vadd.f32 %v2439_v24, %v907_v32  ;;  %1335 = vmatmul.mubr.bf16.gmra.mrb[36].mxu1 %v1088_v27  ;;  %v1046_v38 = vmax.f32 %v982_v31, 0.0 }
 0x1d4   : > { %v985_v37 = vadd.f32 %v2441_v26, %v908_v35  ;;  %v1047_v40 = vmax.f32 %v983_v34, 0.0 }
 0x1d5   : > { %v1048_v39 = vmax.f32 %v984_v36, 0.0 }
 0x1d6   : > { %v1049_v41 = vmax.f32 %v985_v37, 0.0  ;;  %v804_v42 = vpop.f32.mrb[44].mxu0 }
 0x1d7   : > { %v909_v43 = vmul.f32 %v2435_v22, %v804_v42  ;;  %v806_v44 = vpop.f32.mrb[45].mxu0  ;;  %v1090_v45 = vpack.c.bf16 %v1048_v39, %v1046_v38 }
 0x1d8   : > { %v910_v46 = vmul.f32 %v2437_v23, %v806_v44  ;;  %v808_v47 = vpop.f32.mrb[46].mxu0  ;;  %v1091_v48 = vpack.c.bf16 %v1049_v41, %v1047_v40 }
 0x1d9   : > { %v986_v49 = vadd.f32 %v2439_v24, %v909_v43  ;;  %v911_v50 = vmul.f32 %v2435_v22, %v808_v47  ;;  %v810_v51 = vpop.f32.mrb[47].mxu0 }
 0x1da   : > { %v987_v52 = vadd.f32 %v2441_v26, %v910_v46  ;;  %v912_v53 = vmul.f32 %v2437_v23, %v810_v51  ;;  %1342 = vmatprep.mubr.bf16.mxu1 %v1091_v48 }
 0x1db   : > { %v988_v54 = vadd.f32 %v2439_v24, %v911_v50  ;;  %1343 = vmatmul.mubr.bf16.gmra.mrb[40].mxu1 %v1090_v45  ;;  %v1050_v56 = vmax.f32 %v986_v49, 0.0 }
 0x1dc   : > { %v989_v55 = vadd.f32 %v2441_v26, %v912_v53  ;;  %v1051_v58 = vmax.f32 %v987_v52, 0.0 }
 0x1dd   : > { %v1052_v57 = vmax.f32 %v988_v54, 0.0 }
 0x1de   : > { %v1053_v59 = vmax.f32 %v989_v55, 0.0  ;;  %v814_v60 = vpop.f32.mrb[48].mxu0 }
 0x1df   : > { %v913_v61 = vmul.f32 %v2435_v22, %v814_v60  ;;  %v816_v62 = vpop.f32.mrb[49].mxu0  ;;  %v1092_v63 = vpack.c.bf16 %v1052_v57, %v1050_v56 }
 0x1e0   : > { %v914_v0 = vmul.f32 %v2437_v23, %v816_v62  ;;  %v818_v1 = vpop.f32.mrb[50].mxu0  ;;  %v1093_v2 = vpack.c.bf16 %v1053_v59, %v1051_v58 }
 0x1e1   : > { %v990_v3 = vadd.f32 %v2439_v24, %v913_v61  ;;  %v915_v4 = vmul.f32 %v2435_v22, %v818_v1  ;;  %v820_v5 = vpop.f32.mrb[51].mxu0 }
 0x1e2   : > { %v991_v6 = vadd.f32 %v2441_v26, %v914_v0  ;;  %v916_v7 = vmul.f32 %v2437_v23, %v820_v5  ;;  %1350 = vmatprep.mubr.bf16.mxu1 %v1093_v2 }
 0x1e3   : > { %v992_v8 = vadd.f32 %v2439_v24, %v915_v4  ;;  %1351 = vmatmul.mubr.bf16.gmra.mrb[44].mxu1 %v1092_v63  ;;  %v1054_v10 = vmax.f32 %v990_v3, 0.0 }
 0x1e4   : > { %v993_v9 = vadd.f32 %v2441_v26, %v916_v7  ;;  %v1055_v12 = vmax.f32 %v991_v6, 0.0 }
 0x1e5   : > { %v1056_v11 = vmax.f32 %v992_v8, 0.0 }
 0x1e6   : > { %v1057_v13 = vmax.f32 %v993_v9, 0.0  ;;  %v824_v14 = vpop.f32.mrb[52].mxu0 }
 0x1e7   : > { %v917_v15 = vmul.f32 %v2435_v22, %v824_v14  ;;  %v826_v16 = vpop.f32.mrb[53].mxu0  ;;  %v1094_v17 = vpack.c.bf16 %v1056_v11, %v1054_v10 }
 0x1e8   : > { %v918_v18 = vmul.f32 %v2437_v23, %v826_v16  ;;  %v828_v19 = vpop.f32.mrb[54].mxu0  ;;  %v1095_v20 = vpack.c.bf16 %v1057_v13, %v1055_v12 }
 0x1e9   : > { %v994_v21 = vadd.f32 %v2439_v24, %v917_v15  ;;  %v919_v25 = vmul.f32 %v2435_v22, %v828_v19  ;;  %v830_v27 = vpop.f32.mrb[55].mxu0 }
 0x1ea   : > { %v995_v28 = vadd.f32 %v2441_v26, %v918_v18  ;;  %v920_v29 = vmul.f32 %v2437_v23, %v830_v27  ;;  %1358 = vmatprep.mubr.bf16.mxu1 %v1095_v20 }
 0x1eb   : > { %v996_v30 = vadd.f32 %v2439_v24, %v919_v25  ;;  %1359 = vmatmul.mubr.bf16.gmra.mrb[48].mxu1 %v1094_v17  ;;  %v1058_v32 = vmax.f32 %v994_v21, 0.0 }
 0x1ec   : > { %v997_v31 = vadd.f32 %v2441_v26, %v920_v29  ;;  %v1059_v34 = vmax.f32 %v995_v28, 0.0 }
 0x1ed   : > { %v1060_v33 = vmax.f32 %v996_v30, 0.0 }
 0x1ee   : > { %v1061_v35 = vmax.f32 %v997_v31, 0.0  ;;  %v834_v36 = vpop.f32.mrb[56].mxu0 }
 0x1ef   : > { %v921_v37 = vmul.f32 %v2435_v22, %v834_v36  ;;  %v836_v38 = vpop.f32.mrb[57].mxu0  ;;  %v1096_v39 = vpack.c.bf16 %v1060_v33, %v1058_v32 }
 0x1f0   : > { %v922_v40 = vmul.f32 %v2437_v23, %v836_v38  ;;  %v838_v41 = vpop.f32.mrb[58].mxu0  ;;  %v1097_v42 = vpack.c.bf16 %v1061_v35, %v1059_v34 }
 0x1f1   : > { %v998_v43 = vadd.f32 %v2439_v24, %v921_v37  ;;  %v923_v44 = vmul.f32 %v2435_v22, %v838_v41  ;;  %v840_v45 = vpop.f32.mrb[59].mxu0 }
 0x1f2   : > { %v999_v46 = vadd.f32 %v2441_v26, %v922_v40  ;;  %v924_v47 = vmul.f32 %v2437_v23, %v840_v45  ;;  %1366 = vmatprep.mubr.bf16.mxu1 %v1097_v42 }
 0x1f3   : > { %v1000_v48 = vadd.f32 %v2439_v24, %v923_v44  ;;  %1367 = vmatmul.mubr.bf16.gmra.mrb[52].mxu1 %v1096_v39  ;;  %v1062_v50 = vmax.f32 %v998_v43, 0.0 }
 0x1f4   : > { %v1001_v49 = vadd.f32 %v2441_v26, %v924_v47  ;;  %v1063_v52 = vmax.f32 %v999_v46, 0.0 }
 0x1f5   : > { %v1064_v51 = vmax.f32 %v1000_v48, 0.0 }
 0x1f6   : > { %v1065_v53 = vmax.f32 %v1001_v49, 0.0  ;;  %v844_v54 = vpop.f32.mrb[60].mxu0 }
 0x1f7   : > { %v925_v55 = vmul.f32 %v2435_v22, %v844_v54  ;;  %v846_v56 = vpop.f32.mrb[61].mxu0  ;;  %v1098_v57 = vpack.c.bf16 %v1064_v51, %v1062_v50 }
 0x1f8   : > { %v926_v58 = vmul.f32 %v2437_v23, %v846_v56  ;;  %v848_v59 = vpop.f32.mrb[62].mxu0  ;;  %v1099_v60 = vpack.c.bf16 %v1065_v53, %v1063_v52 }
 0x1f9   : > { %v1002_v61 = vadd.f32 %v2439_v24, %v925_v55  ;;  %v927_v62 = vmul.f32 %v2435_v22, %v848_v59  ;;  %v850_v63 = vpop.f32.mrb[63].mxu0 }
 0x1fa   : > { %v1003_v0 = vadd.f32 %v2441_v26, %v926_v58  ;;  %v928_v1 = vmul.f32 %v2437_v23, %v850_v63  ;;  %1374 = vmatprep.mubr.bf16.mxu1 %v1099_v60  ;;  %v2574_v23 = vld [vmem:[%s2736_s4] ss:$0 sm:$0xff] }
 0x1fb   : > { %v1004_v2 = vadd.f32 %v2439_v24, %v927_v62  ;;  %1375 = vmatmul.mubr.bf16.gmra.mrb[56].mxu1 %v1098_v57  ;;  %v1066_v4 = vmax.f32 %v1002_v61, 0.0 }
 0x1fc   : > { %v1005_v3 = vadd.f32 %v2441_v26, %v928_v1  ;;  %v1067_v6 = vmax.f32 %v1003_v0, 0.0  ;;  %v2579_v26 = vld [vmem:[%s2736_s4 + $0x1] ss:$0 sm:$0xff] }
 0x1fd   : > { %v1068_v5 = vmax.f32 %v1004_v2, 0.0 }
 0x1fe   : > { %v1069_v7 = vmax.f32 %v1005_v3, 0.0 }
 0x1ff   : > { %v1100_v8 = vpack.c.bf16 %v1068_v5, %v1066_v4 }
 0x200   : > { %v1101_v9 = vpack.c.bf16 %v1069_v7, %v1067_v6 }
 0x202   : > { %1382 = vmatprep.mubr.bf16.mxu1 %v1101_v9 }
 0x203   : > { %1383 = vmatmul.mubr.bf16.gmra.mrb[60].mxu1 %v1100_v8 }
 0x25e   : > { %v1724_v22 = vpop.f32.mrb[0].mxu1 }
 0x25f   : > { %v1725_v10 = vpop.f32.mrb[1].mxu1 }
 0x260   : > { %v1726_v24 = vadd.f32 %v1725_v10, %v1724_v22  ;;  %v1727_v11 = vpop.f32.mrb[2].mxu1 }
 0x261   : > { %v1728_v12 = vpop.f32.mrb[3].mxu1 }
 0x262   : > { %v1396_v13 = vmul.f32 %v1726_v24, %v2574_v23  ;;  %v1729_v14 = vadd.f32 %v1728_v12, %v1727_v11 }
 0x264   : > { %v1433_v15 = vadd.f32 %v2579_v26, %v1396_v13  ;;  %v1397_v16 = vmul.f32 %v1729_v14, %v2574_v23 }
 0x266   : > { %1465 = vst [vmem:[%s2586_s29] sm:$0xff] %v1433_v15  ;;  %v1434_v17 = vadd.f32 %v2579_v26, %v1397_v16  ;;  %v1730_v18 = vpop.f32.mrb[4].mxu1 }
 0x267   : > { %v1731_v19 = vpop.f32.mrb[5].mxu1 }
 0x268   : > { %1466 = vst [vmem:[%s2586_s29 + $0x8] sm:$0xff] %v1434_v17  ;;  %v1732_v20 = vadd.f32 %v1731_v19, %v1730_v18  ;;  %v1733_v21 = vpop.f32.mrb[6].mxu1 }
 0x269   : > { %v1734_v25 = vpop.f32.mrb[7].mxu1 }
 0x26a   : > { %v1398_v27 = vmul.f32 %v1732_v20, %v2574_v23  ;;  %v1735_v28 = vadd.f32 %v1734_v25, %v1733_v21 }
 0x26c   : > { %v1435_v29 = vadd.f32 %v2579_v26, %v1398_v27  ;;  %v1399_v30 = vmul.f32 %v1735_v28, %v2574_v23 }
 0x26e   : > { %1467 = vst [vmem:[%s2586_s29 + $0x10] sm:$0xff] %v1435_v29  ;;  %v1436_v31 = vadd.f32 %v2579_v26, %v1399_v30  ;;  %v1736_v32 = vpop.f32.mrb[8].mxu1 }
 0x26f   : > { %v1737_v33 = vpop.f32.mrb[9].mxu1 }
 0x270   : > { %1468 = vst [vmem:[%s2586_s29 + $0x18] sm:$0xff] %v1436_v31  ;;  %v1738_v34 = vadd.f32 %v1737_v33, %v1736_v32  ;;  %v1739_v35 = vpop.f32.mrb[10].mxu1 }
 0x271   : > { %v1740_v36 = vpop.f32.mrb[11].mxu1 }
 0x272   : > { %v1400_v37 = vmul.f32 %v1738_v34, %v2574_v23  ;;  %v1741_v38 = vadd.f32 %v1740_v36, %v1739_v35 }
 0x274   : > { %v1437_v39 = vadd.f32 %v2579_v26, %v1400_v37  ;;  %v1401_v40 = vmul.f32 %v1741_v38, %v2574_v23 }
 0x276   : > { %1469 = vst [vmem:[%s2586_s29 + $0x20] sm:$0xff] %v1437_v39  ;;  %v1438_v41 = vadd.f32 %v2579_v26, %v1401_v40  ;;  %v1742_v42 = vpop.f32.mrb[12].mxu1 }
 0x277   : > { %v1743_v43 = vpop.f32.mrb[13].mxu1 }
 0x278   : > { %1470 = vst [vmem:[%s2586_s29 + $0x28] sm:$0xff] %v1438_v41  ;;  %v1744_v44 = vadd.f32 %v1743_v43, %v1742_v42  ;;  %v1745_v45 = vpop.f32.mrb[14].mxu1 }
 0x279   : > { %v1746_v46 = vpop.f32.mrb[15].mxu1 }
 0x27a   : > { %v1402_v47 = vmul.f32 %v1744_v44, %v2574_v23  ;;  %v1747_v48 = vadd.f32 %v1746_v46, %v1745_v45 }
 0x27c   : > { %v1439_v49 = vadd.f32 %v2579_v26, %v1402_v47  ;;  %v1403_v50 = vmul.f32 %v1747_v48, %v2574_v23 }
 0x27e   : > { %1471 = vst [vmem:[%s2586_s29 + $0x30] sm:$0xff] %v1439_v49  ;;  %v1440_v51 = vadd.f32 %v2579_v26, %v1403_v50  ;;  %v1748_v52 = vpop.f32.mrb[16].mxu1 }
 0x27f   : > { %v1749_v53 = vpop.f32.mrb[17].mxu1 }
 0x280   : > { %1472 = vst [vmem:[%s2586_s29 + $0x38] sm:$0xff] %v1440_v51  ;;  %v1750_v54 = vadd.f32 %v1749_v53, %v1748_v52  ;;  %v1751_v55 = vpop.f32.mrb[18].mxu1 }
 0x281   : > { %v1752_v56 = vpop.f32.mrb[19].mxu1 }
 0x282   : > { %v1404_v57 = vmul.f32 %v1750_v54, %v2574_v23  ;;  %v1753_v58 = vadd.f32 %v1752_v56, %v1751_v55 }
 0x284   : > { %v1441_v59 = vadd.f32 %v2579_v26, %v1404_v57  ;;  %v1405_v60 = vmul.f32 %v1753_v58, %v2574_v23 }
 0x286   : > { %1473 = vst [vmem:[%s2586_s29 + $0x40] sm:$0xff] %v1441_v59  ;;  %v1442_v61 = vadd.f32 %v2579_v26, %v1405_v60  ;;  %v1754_v62 = vpop.f32.mrb[20].mxu1 }
 0x287   : > { %v1755_v63 = vpop.f32.mrb[21].mxu1 }
 0x288   : > { %1474 = vst [vmem:[%s2586_s29 + $0x48] sm:$0xff] %v1442_v61  ;;  %v1756_v0 = vadd.f32 %v1755_v63, %v1754_v62  ;;  %v1757_v1 = vpop.f32.mrb[22].mxu1 }
 0x289   : > { %v1758_v2 = vpop.f32.mrb[23].mxu1 }
 0x28a   : > { %v1406_v3 = vmul.f32 %v1756_v0, %v2574_v23  ;;  %v1759_v4 = vadd.f32 %v1758_v2, %v1757_v1 }
 0x28c   : > { %v1443_v5 = vadd.f32 %v2579_v26, %v1406_v3  ;;  %v1407_v6 = vmul.f32 %v1759_v4, %v2574_v23 }
 0x28e   : > { %1475 = vst [vmem:[%s2586_s29 + $0x50] sm:$0xff] %v1443_v5  ;;  %v1444_v7 = vadd.f32 %v2579_v26, %v1407_v6  ;;  %v1760_v8 = vpop.f32.mrb[24].mxu1 }
 0x28f   : > { %v1761_v9 = vpop.f32.mrb[25].mxu1 }
 0x290   : > { %1476 = vst [vmem:[%s2586_s29 + $0x58] sm:$0xff] %v1444_v7  ;;  %v1762_v22 = vadd.f32 %v1761_v9, %v1760_v8  ;;  %v1763_v10 = vpop.f32.mrb[26].mxu1 }
 0x291   : > { %v1764_v24 = vpop.f32.mrb[27].mxu1 }
 0x292   : > { %v1408_v11 = vmul.f32 %v1762_v22, %v2574_v23  ;;  %v1765_v12 = vadd.f32 %v1764_v24, %v1763_v10 }
 0x294   : > { %v1445_v13 = vadd.f32 %v2579_v26, %v1408_v11  ;;  %v1409_v14 = vmul.f32 %v1765_v12, %v2574_v23 }
 0x296   : > { %1477 = vst [vmem:[%s2586_s29 + $0x60] sm:$0xff] %v1445_v13  ;;  %v1446_v15 = vadd.f32 %v2579_v26, %v1409_v14  ;;  %v1766_v16 = vpop.f32.mrb[28].mxu1 }
 0x297   : > { %v1767_v17 = vpop.f32.mrb[29].mxu1 }
 0x298   : > { %1478 = vst [vmem:[%s2586_s29 + $0x68] sm:$0xff] %v1446_v15  ;;  %v1768_v18 = vadd.f32 %v1767_v17, %v1766_v16  ;;  %v1769_v19 = vpop.f32.mrb[30].mxu1 }
 0x299   : > { %v1770_v20 = vpop.f32.mrb[31].mxu1 }
 0x29a   : > { %v1410_v21 = vmul.f32 %v1768_v18, %v2574_v23  ;;  %v1771_v25 = vadd.f32 %v1770_v20, %v1769_v19 }
 0x29c   : > { %v1447_v27 = vadd.f32 %v2579_v26, %v1410_v21  ;;  %v1411_v28 = vmul.f32 %v1771_v25, %v2574_v23 }
 0x29e   : > { %1479 = vst [vmem:[%s2586_s29 + $0x70] sm:$0xff] %v1447_v27  ;;  %v1448_v29 = vadd.f32 %v2579_v26, %v1411_v28  ;;  %v1772_v30 = vpop.f32.mrb[32].mxu1 }
 0x29f   : > { %v1773_v31 = vpop.f32.mrb[33].mxu1 }
 0x2a0   : > { %1480 = vst [vmem:[%s2586_s29 + $0x78] sm:$0xff] %v1448_v29  ;;  %v1774_v32 = vadd.f32 %v1773_v31, %v1772_v30  ;;  %v1775_v33 = vpop.f32.mrb[34].mxu1 }
 0x2a1   : > { %v1776_v34 = vpop.f32.mrb[35].mxu1 }
 0x2a2   : > { %v1412_v35 = vmul.f32 %v1774_v32, %v2574_v23  ;;  %v1777_v36 = vadd.f32 %v1776_v34, %v1775_v33 }
 0x2a4   : > { %v1449_v37 = vadd.f32 %v2579_v26, %v1412_v35  ;;  %v1413_v38 = vmul.f32 %v1777_v36, %v2574_v23 }
 0x2a6   : > { %1481 = vst [vmem:[%s2586_s29 + $0x80] sm:$0xff] %v1449_v37  ;;  %v1450_v39 = vadd.f32 %v2579_v26, %v1413_v38  ;;  %v1778_v40 = vpop.f32.mrb[36].mxu1 }
 0x2a7   : > { %v1779_v41 = vpop.f32.mrb[37].mxu1 }
 0x2a8   : > { %1482 = vst [vmem:[%s2586_s29 + $0x88] sm:$0xff] %v1450_v39  ;;  %v1780_v42 = vadd.f32 %v1779_v41, %v1778_v40  ;;  %v1781_v43 = vpop.f32.mrb[38].mxu1 }
 0x2a9   : > { %v1782_v44 = vpop.f32.mrb[39].mxu1 }
 0x2aa   : > { %v1414_v45 = vmul.f32 %v1780_v42, %v2574_v23  ;;  %v1783_v46 = vadd.f32 %v1782_v44, %v1781_v43 }
 0x2ac   : > { %v1451_v47 = vadd.f32 %v2579_v26, %v1414_v45  ;;  %v1415_v48 = vmul.f32 %v1783_v46, %v2574_v23 }
 0x2ae   : > { %1483 = vst [vmem:[%s2586_s29 + $0x90] sm:$0xff] %v1451_v47  ;;  %v1452_v49 = vadd.f32 %v2579_v26, %v1415_v48  ;;  %v1784_v50 = vpop.f32.mrb[40].mxu1 }
 0x2af   : > { %v1785_v51 = vpop.f32.mrb[41].mxu1 }
 0x2b0   : > { %1484 = vst [vmem:[%s2586_s29 + $0x98] sm:$0xff] %v1452_v49  ;;  %v1786_v52 = vadd.f32 %v1785_v51, %v1784_v50  ;;  %v1787_v53 = vpop.f32.mrb[42].mxu1 }
 0x2b1   : > { %v1788_v54 = vpop.f32.mrb[43].mxu1 }
 0x2b2   : > { %v1416_v55 = vmul.f32 %v1786_v52, %v2574_v23  ;;  %v1789_v56 = vadd.f32 %v1788_v54, %v1787_v53 }
 0x2b4   : > { %v1453_v57 = vadd.f32 %v2579_v26, %v1416_v55  ;;  %v1417_v58 = vmul.f32 %v1789_v56, %v2574_v23 }
 0x2b6   : > { %1485 = vst [vmem:[%s2586_s29 + $0xa0] sm:$0xff] %v1453_v57  ;;  %v1454_v59 = vadd.f32 %v2579_v26, %v1417_v58  ;;  %v1790_v60 = vpop.f32.mrb[44].mxu1 }
 0x2b7   : > { %v1791_v61 = vpop.f32.mrb[45].mxu1 }
 0x2b8   : > { %1486 = vst [vmem:[%s2586_s29 + $0xa8] sm:$0xff] %v1454_v59  ;;  %v1792_v62 = vadd.f32 %v1791_v61, %v1790_v60  ;;  %v1793_v63 = vpop.f32.mrb[46].mxu1 }
 0x2b9   : > { %v1794_v0 = vpop.f32.mrb[47].mxu1 }
 0x2ba   : > { %v1418_v1 = vmul.f32 %v1792_v62, %v2574_v23  ;;  %v1795_v2 = vadd.f32 %v1794_v0, %v1793_v63 }
 0x2bc   : > { %v1455_v3 = vadd.f32 %v2579_v26, %v1418_v1  ;;  %v1419_v4 = vmul.f32 %v1795_v2, %v2574_v23 }
 0x2be   : > { %1487 = vst [vmem:[%s2586_s29 + $0xb0] sm:$0xff] %v1455_v3  ;;  %v1456_v5 = vadd.f32 %v2579_v26, %v1419_v4  ;;  %v1796_v6 = vpop.f32.mrb[48].mxu1 }
 0x2bf   : > { %v1797_v7 = vpop.f32.mrb[49].mxu1 }
 0x2c0   : > { %1488 = vst [vmem:[%s2586_s29 + $0xb8] sm:$0xff] %v1456_v5  ;;  %v1798_v8 = vadd.f32 %v1797_v7, %v1796_v6  ;;  %v1799_v9 = vpop.f32.mrb[50].mxu1 }
 0x2c1   : > { %v1800_v22 = vpop.f32.mrb[51].mxu1 }
 0x2c2   : > { %v1420_v10 = vmul.f32 %v1798_v8, %v2574_v23  ;;  %v1801_v24 = vadd.f32 %v1800_v22, %v1799_v9 }
 0x2c4   : > { %v1457_v11 = vadd.f32 %v2579_v26, %v1420_v10  ;;  %v1421_v12 = vmul.f32 %v1801_v24, %v2574_v23 }
 0x2c6   : > { %1489 = vst [vmem:[%s2586_s29 + $0xc0] sm:$0xff] %v1457_v11  ;;  %v1458_v13 = vadd.f32 %v2579_v26, %v1421_v12  ;;  %v1802_v14 = vpop.f32.mrb[52].mxu1 }
 0x2c7   : > { %v1803_v15 = vpop.f32.mrb[53].mxu1 }
 0x2c8   : > { %1490 = vst [vmem:[%s2586_s29 + $0xc8] sm:$0xff] %v1458_v13  ;;  %v1804_v16 = vadd.f32 %v1803_v15, %v1802_v14  ;;  %v1805_v17 = vpop.f32.mrb[54].mxu1 }
 0x2c9   : > { %v1806_v18 = vpop.f32.mrb[55].mxu1 }
 0x2ca   : > { %v1422_v19 = vmul.f32 %v1804_v16, %v2574_v23  ;;  %v1807_v20 = vadd.f32 %v1806_v18, %v1805_v17 }
 0x2cc   : > { %v1459_v21 = vadd.f32 %v2579_v26, %v1422_v19  ;;  %v1423_v25 = vmul.f32 %v1807_v20, %v2574_v23 }
 0x2ce   : > { %1491 = vst [vmem:[%s2586_s29 + $0xd0] sm:$0xff] %v1459_v21  ;;  %v1460_v27 = vadd.f32 %v2579_v26, %v1423_v25  ;;  %v1808_v28 = vpop.f32.mrb[56].mxu1 }
 0x2cf   : > { %v1809_v29 = vpop.f32.mrb[57].mxu1 }
 0x2d0   : > { %1492 = vst [vmem:[%s2586_s29 + $0xd8] sm:$0xff] %v1460_v27  ;;  %v1810_v30 = vadd.f32 %v1809_v29, %v1808_v28  ;;  %v1811_v31 = vpop.f32.mrb[58].mxu1 }
 0x2d1   : > { %v1812_v32 = vpop.f32.mrb[59].mxu1 }
 0x2d2   : > { %v1424_v33 = vmul.f32 %v1810_v30, %v2574_v23  ;;  %v1813_v34 = vadd.f32 %v1812_v32, %v1811_v31 }
 0x2d4   : > { %v1461_v35 = vadd.f32 %v2579_v26, %v1424_v33  ;;  %v1425_v36 = vmul.f32 %v1813_v34, %v2574_v23 }
 0x2d6   : > { %1493 = vst [vmem:[%s2586_s29 + $0xe0] sm:$0xff] %v1461_v35  ;;  %v1462_v37 = vadd.f32 %v2579_v26, %v1425_v36  ;;  %v1814_v38 = vpop.f32.mrb[60].mxu1 }
 0x2d7   : > { %v1815_v39 = vpop.f32.mrb[61].mxu1 }
 0x2d8   : > { %1494 = vst [vmem:[%s2586_s29 + $0xe8] sm:$0xff] %v1462_v37  ;;  %v1816_v40 = vadd.f32 %v1815_v39, %v1814_v38  ;;  %v1817_v41 = vpop.f32.mrb[62].mxu1 }
 0x2d9   : > { %v1818_v42 = vpop.f32.mrb[63].mxu1 }
 0x2da   : > { %v1426_v43 = vmul.f32 %v1816_v40, %v2574_v23  ;;  %v1819_v44 = vadd.f32 %v1818_v42, %v1817_v41 }
 0x2dc   : > { %v1463_v45 = vadd.f32 %v2579_v26, %v1426_v43  ;;  %v1427_v46 = vmul.f32 %v1819_v44, %v2574_v23 }
 0x2de   : > { %1495 = vst [vmem:[%s2586_s29 + $0xf0] sm:$0xff] %v1463_v45  ;;  %v1464_v47 = vadd.f32 %v2579_v26, %v1427_v46 }
 0x2e0   : > { %1496 = vst [vmem:[%s2586_s29 + $0xf8] sm:$0xff] %v1464_v47 }
 0x2e1   : > { %2104 = shalt.err (!%p2101_p1)
}
 0x2e2   : > { %s2105_s16 = scalar_lea.hbm %s2683_s10, 4096  ;;  %s2109_s17 = scalar_lea.hbm %s2737_s5, 8192 }
 0x2e3   : > { %p2106_p13 = scmp.ne.s32.totalorder %s2683_s10, %s2105_s16  ;;  %p2110_p4 = scmp.lt.u32.totalorder %s2683_s10, %s2737_s5 }
 0x2e4   : > { %p2111_p7 = scmp.lt.u32.totalorder %s2109_s17, %s2105_s16  ;;  %p2113_p11 = scmp.lt.u32.totalorder %s2105_s16, %s2683_s10 }
 0x2e5   : > { %p2107_p6 = pnand %p2106_p13, %p2751_p0 }
 0x2e6   : > { %p2112_p8 = por %p2111_p7, %p2110_p4 }
 0x2e7   : > { %p2108_p10 = pneg %p2107_p6 }
 0x2e8   : > { %p2114_p2 = por %p2113_p11, %p2112_p8 }
 0x2ea   : > { %p2115_p3 = pnand %p2114_p2, %p2108_p10 }
 0x2ec   : > { %2118 = shalt.err (!%p2115_p3)
}
 0x2ed   : > { %s2171_s12 = smov 128   ;;  %s2172_s9 = smov 8  }
 0x2ee   : > { %1830 = dma.vmem_to_hbm [thread:$0]  (%p2751_p0), %s2685_s30, 4096, %s2683_s10, %s1498_s22, %s2171_s12, %s2171_s12, %s2172_s9  }
 0x2ef PF: > { %s1526_s6 = sand.u32 1, %s2149_s18   ;;  %p2752_p5 = scmp.ne.s32.totalorder %s2742_s25, 0 }
 0x2f0   : > { %p2753_p9 = scmp.ge.s32.totalorder %s2161_s21, 2  ;;  %s1527_s14 = scalar_lea.sflag [#allocation4], %s1526_s6 }
 0x2f2   : > { %p1844_p12 = pnand %p2753_p9, %p2752_p5 }
 0x2f4   : > { %2144 = dma.done.wait (!%p1844_p12), %s1527_s14, 4096  }
 0x2f5   : > { %2146 = vsyncadd (!%p1844_p12), %s1527_s14, 4294963200  ;;  %p19_p1 = scmp.ge.s32.totalorder %s2316_s23, 4   ;;  %s2754_s18 = smov %s2153_s19 }
 0x2f6   : > { %s2755_s19 = smov %s2157_s20  ;;  %s2756_s20 = smov %s2325_s7 }
 0x2f7   : > { %s2757_s21 = smov %s2316_s23  ;;  %21 = sbr.rel (!%p19_p1) target bundleno = 6 (0x6), region = 94 }
 0x2fe   :  { %1532 = vsyncpa [#allocation3], 1 }
 0x2ff   :  { %1534 = vsyncpa [#allocation3 + $0x1], 1 }
 0x300   :  { %1535 = vsyncpa [#allocation6], 1 }
 0x301   :  { %1536 = vsyncpa [#allocation4], 1 }
 0x302   :  { %1538 = vsyncpa [#allocation4 + $0x1], 1 }

</bundles_post_ra>
